<compile_context>
chip_gen: v7x
topology: tpu7x:2x2x1
jax: 0.10.0
libtpu: 0.0.40
codegen_flags: <defaults>
</compile_context>

<pallas_src>
import jax
import jax.numpy as jnp
from jax import lax
from jax.experimental import pallas as pl
from jax.experimental.pallas import tpu as pltpu


def _round_up(x, m):
    return (x + m - 1) // m * m


def _vmem_limit(need_bytes):
    """Per-call VMEM budget: actual need + 50% headroom, clamped to [32, 64] MiB
    (64 MiB is v7x's per-TensorCore VMEM; v5e/v6e have plenty more)."""
    return int(min(max(need_bytes + (need_bytes >> 1) + (2 << 20), 32 << 20), 64 << 20))


def _pick_block_rows(n_rows, target):
    """Largest row-block <= target that divides n_rows and is a multiple of 16."""
    bm = min(n_rows, max(16, target - target % 16))
    bm -= bm % 16
    while n_rows % bm:
        bm -= 16
    return bm


def _pick_batch_tile(bp, target=64):
    bt = min(bp, _round_up(target, 16))
    while bp % bt:
        bt -= 16
    return bt


# ----------------------------------------------------------------------------
# Pallas kernels
# ----------------------------------------------------------------------------
def _make_linear_kernel(n_in):
    """o_0..o_{m-1} = split(x_0 @ w_0 + ... + x_{n-1} @ w_{n-1} + b).

    refs order: x_0..x_{n-1}, w_0..w_{n-1}, b, o_0..o_{m-1}.
    Activations are cast to bf16 in-kernel (no extra HBM pass); f32 MXU acc.
    """
    def kernel(*refs):
        xs = refs[:n_in]
        ws = refs[n_in:2 * n_in]
        b_ref = refs[2 * n_in]
        o_refs = refs[2 * n_in + 1:]
        acc = jnp.dot(xs[0][...].astype(jnp.bfloat16), ws[0][...],
                      preferred_element_type=jnp.float32)
        for x_ref, w_ref in zip(xs[1:], ws[1:]):
            acc = acc + jnp.dot(x_ref[...].astype(jnp.bfloat16), w_ref[...],
                                preferred_element_type=jnp.float32)
        acc = acc + b_ref[...]
        off = 0
        for o_ref in o_refs:
            width = o_ref.shape[-1]
            o_ref[...] = acc[:, off:off + width].astype(o_ref.dtype)
            off += width
    return kernel


def _bilstm_kernel(gxf_ref, gxb_ref, mf_ref, mb_ref, whh_ref,
                   of_ref, ob_ref, hf, cf, hb, cb):
    """Fused bidirectional LSTM recurrence over one time chunk / batch tile.

    Grid: (batch_tile "parallel", time_chunk "arbitrary").
    gxf_ref : [Tc, Bt, 4Hp] bf16  fwd gates of chunk tc        (x@W + b folded)
    gxb_ref : [Tc, Bt, 4Hp] bf16  bwd gates of chunk nchunks-1-tc
    mf_ref  : [Tc, Bt, 1]   f32   prefix-mask of chunk tc
    mb_ref  : [Tc, Bt, 1]   f32   prefix-mask of chunk nchunks-1-tc
    whh_ref : [2, Hp, 4Hp]  bf16  hidden->gate weights (fwd, bwd)
    of_ref  : [Tc, Bt, Hp]  bf16  fwd hidden output (chunk tc)
    ob_ref  : [Tc, Bt, Hp]  bf16  bwd hidden output (chunk nchunks-1-tc)
    hf/cf/hb/cb : [Bt, Hp] f32 scratch, persistent across time chunks.

    Gate lane layout is [i, f, o, g] (re-packed from PyTorch's [i, f, g, o])
    so i/f/o share one sigmoid over a contiguous [Bt, 3Hp] slice.  Masked
    update reproduces pack_padded_sequence / pad_packed_sequence semantics for
    prefix masks: state only advances at valid steps; padded steps emit zeros.
    """
    Tc = gxf_ref.shape[0]
    Hp = hf.shape[-1]

    @pl.when(pl.program_id(1) == 0)
    def _init():
        hf[...] = jnp.zeros_like(hf)
        cf[...] = jnp.zeros_like(cf)
        hb[...] = jnp.zeros_like(hb)
        cb[...] = jnp.zeros_like(cb)

    def step(s, carry):
        tb = Tc - 1 - s
        # ---- forward direction (local step s) ----
        mf = mf_ref[s]                                            # [Bt, 1] f32
        g_f = gxf_ref[s].astype(jnp.float32) + jnp.dot(
            hf[...].astype(jnp.bfloat16), whh_ref[0],
            preferred_element_type=jnp.float32)
        ifo_f = jax.nn.sigmoid(g_f[:, :3 * Hp])
        gg_f = jnp.tanh(g_f[:, 3 * Hp:])
        c_new_f = ifo_f[:, Hp:2 * Hp] * cf[...] + ifo_f[:, :Hp] * gg_f
        h_new_f = ifo_f[:, 2 * Hp:3 * Hp] * jnp.tanh(c_new_f)
        # ---- backward direction (local step Tc-1-s) ----
        mb = mb_ref[tb]
        g_b = gxb_ref[tb].astype(jnp.float32) + jnp.dot(
            hb[...].astype(jnp.bfloat16), whh_ref[1],
            preferred_element_type=jnp.float32)
        ifo_b = jax.nn.sigmoid(g_b[:, :3 * Hp])
        gg_b = jnp.tanh(g_b[:, 3 * Hp:])
        c_new_b = ifo_b[:, Hp:2 * Hp] * cb[...] + ifo_b[:, :Hp] * gg_b
        h_new_b = ifo_b[:, 2 * Hp:3 * Hp] * jnp.tanh(c_new_b)
        # ---- masked state advance + masked (zero-padded) outputs ----
        vf = mf > 0.0
        vb = mb > 0.0
        hf[...] = jnp.where(vf, h_new_f, hf[...])
        cf[...] = jnp.where(vf, c_new_f, cf[...])
        hb[...] = jnp.where(vb, h_new_b, hb[...])
        cb[...] = jnp.where(vb, c_new_b, cb[...])
        of_ref[s] = (h_new_f * mf).astype(of_ref.dtype)
        ob_ref[tb] = (h_new_b * mb).astype(ob_ref.dtype)
        return carry

    lax.fori_loop(0, Tc, step, 0, unroll=4)


# ----------------------------------------------------------------------------
# Wrappers around pallas_call
# ----------------------------------------------------------------------------
def tiled_linear(xs, ws, b, out_widths, out_dtypes, *, block_rows=1024):
    """Row-tiled multi-input / multi-output linear.

    xs: list of [N, D_i] (f32 or bf16), ws: list of [D_i, Ltot] bf16,
    b: [1, Ltot] f32.  Output `len(out_widths)` arrays, lane-splits of the
    accumulated result (direction-major gate projections or logits).
    """
    n_rows = xs[0].shape[0]
    l_tot = ws[0].shape[1]
    assert sum(out_widths) == l_tot
    bm = _pick_block_rows(n_rows, block_rows)
    n_in = len(xs)

    in_specs = ([pl.BlockSpec((bm, x.shape[1]), lambda i: (i, 0)) for x in xs]
                + [pl.BlockSpec((w.shape[0], l_tot), lambda i: (0, 0)) for w in ws]
                + [pl.BlockSpec((1, l_tot), lambda i: (0, 0))])
    out_specs = tuple(pl.BlockSpec((bm, w_), lambda i: (i, 0)) for w_ in out_widths)
    out_shape = tuple(jax.ShapeDtypeStruct((n_rows, w_), dt)
                      for w_, dt in zip(out_widths, out_dtypes))

    need = sum(2 * bm * x.shape[1] * x.dtype.itemsize for x in xs)
    need += sum(2 * w.size * w.dtype.itemsize for w in ws)
    need += 2 * l_tot * 4
    need += sum(2 * bm * w_ * jnp.dtype(dt).itemsize
                for w_, dt in zip(out_widths, out_dtypes))

    return pl.pallas_call(
        _make_linear_kernel(n_in),
        out_shape=out_shape,
        grid_spec=pltpu.PrefetchScalarGridSpec(
            num_scalar_prefetch=0,
            grid=(n_rows // bm,),
            in_specs=in_specs,
            out_specs=out_specs),
        compiler_params=pltpu.CompilerParams(
            dimension_semantics=("parallel",),
            vmem_limit_bytes=_vmem_limit(need)),
    )(*xs, *ws, b)


def bilstm_layer(gx_f, gx_b, mask_tb1, whh, Hp, chunk):
    """Fused bidirectional LSTM layer.

    gx_f/gx_b: [Tp, Bp, 4Hp] bf16 direction-major gate pre-activations.
    mask_tb1:  [Tp, Bp, 1] f32 prefix mask.
    whh:       [2, Hp, 4Hp] bf16.
    Returns (h_fwd, h_bwd), each [Tp, Bp, Hp] bf16.
    """
    Tp, Bp, _ = gx_f.shape
    nchunks = Tp // chunk
    Bt = _pick_batch_tile(Bp)
    nbt = Bp // Bt

    in_specs = [
        pl.BlockSpec((chunk, Bt, 4 * Hp), lambda bt, tc: (tc, bt, 0)),
        pl.BlockSpec((chunk, Bt, 4 * Hp), lambda bt, tc: (nchunks - 1 - tc, bt, 0)),
        pl.BlockSpec((chunk, Bt, 1), lambda bt, tc: (tc, bt, 0)),
        pl.BlockSpec((chunk, Bt, 1), lambda bt, tc: (nchunks - 1 - tc, bt, 0)),
        pl.BlockSpec((2, Hp, 4 * Hp), lambda bt, tc: (0, 0, 0)),
    ]
    out_specs = (
        pl.BlockSpec((chunk, Bt, Hp), lambda bt, tc: (tc, bt, 0)),
        pl.BlockSpec((chunk, Bt, Hp), lambda bt, tc: (nchunks - 1 - tc, bt, 0)),
    )
    out_shape = (jax.ShapeDtypeStruct((Tp, Bp, Hp), jnp.bfloat16),
                 jax.ShapeDtypeStruct((Tp, Bp, Hp), jnp.bfloat16))

    need = (2 * 2 * chunk * Bt * 4 * Hp * 2       # two gx inputs (bf16, dbl-buf)
            + 2 * 2 * chunk * Bt * 4              # two mask inputs
            + 2 * 2 * Hp * 4 * Hp * 2             # whh
            + 2 * 2 * chunk * Bt * Hp * 2         # two outputs
            + 4 * Bt * Hp * 4)                    # h/c scratch

    return pl.pallas_call(
        _bilstm_kernel,
        out_shape=out_shape,
        grid_spec=pltpu.PrefetchScalarGridSpec(
            num_scalar_prefetch=0,
            grid=(nbt, nchunks),
            in_specs=in_specs,
            out_specs=out_specs,
            scratch_shapes=[pltpu.VMEM((Bt, Hp), jnp.float32) for _ in range(4)]),
        compiler_params=pltpu.CompilerParams(
            dimension_semantics=("parallel", "arbitrary"),
            vmem_limit_bytes=_vmem_limit(need)),
    )(gx_f, gx_b, mask_tb1, mask_tb1, whh)


# ----------------------------------------------------------------------------
# ElmoLSTMCRF forward (default flags: no CRF / no CharCNN / no MHA; eval mode)
# ----------------------------------------------------------------------------
def elmo_lstm_crf_forward(kparams, token_ids, pos_ids, elmo_embed_out):
    Hp, L, Lp = kparams["Hp"], kparams["L"], kparams["Lp"]
    B, T = token_ids.shape

    # mask = torch.sign(torch.abs(token_ids)) -> 1 where token != pad(0)
    mask = (token_ids != 0).astype(jnp.float32)                     # [B, T]

    # Embedding lookups directly in time-major order (glue; small tensors,
    # padding rows of the tables are zero).  Dropout = identity (eval).
    token_embed = jnp.take(kparams["token_emb"], token_ids.T, axis=0)   # [T,B,Dt]
    pos_embed = jnp.take(kparams["pos_emb"], pos_ids.T, axis=0)         # [T,B,Dp]
    elmo_t = jnp.transpose(elmo_embed_out, (1, 0, 2))                   # [T,B,De]
    h0 = jnp.concatenate([elmo_t, token_embed, pos_embed], axis=-1)     # [T,B,E]
    m = jnp.transpose(mask, (1, 0))[:, :, None]                         # [T,B,1]

    # Pad time to a fixed chunk (masked steps are transparent for prefix
    # masks) and batch to the bf16 sublane tile.
    chunk = min(64, _round_up(T, 8))
    Tp = _round_up(T, chunk)
    Bp = _round_up(B, 16)
    if (Tp, Bp) != (T, B):
        h0 = jnp.pad(h0, ((0, Tp - T), (0, Bp - B), (0, 0)))
        m = jnp.pad(m, ((0, Tp - T), (0, Bp - B), (0, 0)))
    N = Tp * Bp

    # Stacked bidirectional LSTM with pack/pad semantics (masked recurrence).
    # The heavy input projection is hoisted into one row-tiled MXU matmul per
    # layer, producing direction-major bf16 gate tensors; no [fwd|bwd] concat
    # of hidden states is ever materialized.
    xs = [h0.reshape(N, h0.shape[-1])]
    for layer in kparams["layers"]:
        gx_f, gx_b = tiled_linear(xs, layer["w_in"], layer["b"],
                                  out_widths=(4 * Hp, 4 * Hp),
                                  out_dtypes=(jnp.bfloat16, jnp.bfloat16))
        h_f, h_b = bilstm_layer(gx_f.reshape(Tp, Bp, 4 * Hp),
                                gx_b.reshape(Tp, Bp, 4 * Hp),
                                m, layer["whh"], Hp, chunk)
        xs = [h_f.reshape(N, Hp), h_b.reshape(N, Hp)]

    # dropout = identity (eval); use_mha=False -> mha_out = lstm_out
    (logits,) = tiled_linear(xs, [kparams["lin_w_f"], kparams["lin_w_b"]],
                             kparams["lin_b"],
                             out_widths=(Lp,), out_dtypes=(jnp.float32,))
    logits = logits.reshape(Tp, Bp, Lp)[:T, :B, :L]                 # drop padding
    return jnp.transpose(logits, (1, 0, 2))                         # [B, T, L]


# ----------------------------------------------------------------------------
# Deterministic parameter construction (synthetic; shapes per __init__)
# ----------------------------------------------------------------------------
def init_params(key, *, vocab_size, token_emb_dim, pos_size, pos_emb_dim,
                elmo_emb_dim, lstm_hidden_dim, lstm_num_layers, label_size,
                pad_token_id=0, pad_pos_id=0):
    """Logical (unpadded) parameters; weight matrices stored [in, out],
    gate order = PyTorch's (i, f, g, o)."""
    keys = iter(jax.random.split(key, 8 + 6 * lstm_num_layers))

    def normal(shape, scale=0.1):
        return scale * jax.random.normal(next(keys), shape, dtype=jnp.float32)

    token_emb = normal((vocab_size, token_emb_dim), 1.0)
    token_emb = token_emb.at[pad_token_id].set(0.0)                 # padding_idx row
    pos_emb = normal((pos_size, pos_emb_dim), 1.0)
    pos_emb = pos_emb.at[pad_pos_id].set(0.0)

    emb_dim = elmo_emb_dim + token_emb_dim + pos_emb_dim
    H = lstm_hidden_dim
    layers = []
    in_dim = emb_dim
    for _ in range(lstm_num_layers):
        layers.append(dict(
            w_ih_f=normal((in_dim, 4 * H)),
            w_hh_f=normal((H, 4 * H)),
            b_f=normal((1, 4 * H)),      # = b_ih + b_hh (forward)
            w_ih_b=normal((in_dim, 4 * H)),
            w_hh_b=normal((H, 4 * H)),
            b_b=normal((1, 4 * H)),      # = b_ih + b_hh (backward)
        ))
        in_dim = 2 * H

    return dict(
        token_emb=token_emb, pos_emb=pos_emb, lstm_layers=layers,
        lstm_hidden_dim=H,
        lin_w=normal((2 * H, label_size)), lin_b=normal((1, label_size)),
        label_size=label_size)


_GATE_PERM = (0, 1, 3, 2)   # kernel gate layout [i, f, o, g]  <-  PyTorch [i, f, g, o]


def prepare_params(p):
    """Pad / re-pack logical params into the lane-aligned kernel layout.

    Hidden dim is padded per-gate to Hp = round_up(H, 128); padded columns /
    rows carry zero weight/bias so padded units stay exactly zero (numerically
    transparent).  Gates are re-ordered to [i, f, o, g].  Labels pad to 128.
    Input-projection weights are split by source (fwd-hidden rows vs bwd-hidden
    rows) so layers can consume direction-major hidden tensors without concat.
    """
    H = p["lstm_hidden_dim"]
    Hp = _round_up(H, 128)
    L = p["label_size"]
    Lp = _round_up(L, 128)

    def pad_gate_cols(w):
        out = jnp.zeros((w.shape[0], 4 * Hp), jnp.float32)
        for dst, src in enumerate(_GATE_PERM):
            out = out.at[:, dst * Hp:dst * Hp + H].set(w[:, src * H:(src + 1) * H])
        return out

    layers = []
    for li, layer in enumerate(p["lstm_layers"]):
        wf = pad_gate_cols(layer["w_ih_f"])          # [in, 4Hp]
        wb = pad_gate_cols(layer["w_ih_b"])
        wcat = jnp.concatenate([wf, wb], axis=1)     # [in, 8Hp]  (fwd | bwd gates)
        if li == 0:
            w_in = [wcat.astype(jnp.bfloat16)]                         # [E, 8Hp]
        else:                                        # input rows = [fwd H | bwd H]
            w_from_f = jnp.zeros((Hp, 8 * Hp), jnp.float32).at[:H].set(wcat[:H])
            w_from_b = jnp.zeros((Hp, 8 * Hp), jnp.float32).at[:H].set(wcat[H:2 * H])
            w_in = [w_from_f.astype(jnp.bfloat16), w_from_b.astype(jnp.bfloat16)]
        b_cat = jnp.concatenate([pad_gate_cols(layer["b_f"]),
                                 pad_gate_cols(layer["b_b"])], axis=1)  # [1, 8Hp]
        whh_f = jnp.zeros((Hp, 4 * Hp), jnp.float32).at[:H].set(
            pad_gate_cols(layer["w_hh_f"]))
        whh_b = jnp.zeros((Hp, 4 * Hp), jnp.float32).at[:H].set(
            pad_gate_cols(layer["w_hh_b"]))
        whh = jnp.stack([whh_f, whh_b], axis=0).astype(jnp.bfloat16)    # [2, Hp, 4Hp]
        layers.append(dict(w_in=w_in, b=b_cat, whh=whh))

    lin_w = p["lin_w"]                                                  # [2H, L]
    lin_w_f = jnp.zeros((Hp, Lp), jnp.float32).at[:H, :L].set(lin_w[:H])
    lin_w_b = jnp.zeros((Hp, Lp), jnp.float32).at[:H, :L].set(lin_w[H:2 * H])
    lin_b = jnp.zeros((1, Lp), jnp.float32).at[:, :L].set(p["lin_b"])

    return dict(token_emb=p["token_emb"], pos_emb=p["pos_emb"],
                layers=layers, H=H, Hp=Hp, L=L, Lp=Lp,
                lin_w_f=lin_w_f.astype(jnp.bfloat16),
                lin_w_b=lin_w_b.astype(jnp.bfloat16),
                lin_b=lin_b)


# ----------------------------------------------------------------------------
if __name__ == "__main__":
    # Small config consistent with the module's __init__.
    B, T = 2, 8
    VOCAB, TOK_EMB = 50, 16
    POS_VOCAB, POS_EMB = 12, 8
    ELMO_EMB = 16
    HIDDEN, NUM_LAYERS = 32, 2
    LABELS = 10

    key = jax.random.PRNGKey(0)
    k_par, k_tok, k_pos, k_elmo = jax.random.split(key, 4)

    logical = init_params(k_par,
                          vocab_size=VOCAB, token_emb_dim=TOK_EMB,
                          pos_size=POS_VOCAB, pos_emb_dim=POS_EMB,
                          elmo_emb_dim=ELMO_EMB,
                          lstm_hidden_dim=HIDDEN, lstm_num_layers=NUM_LAYERS,
                          label_size=LABELS)
    params = prepare_params(logical)

    # token_ids: padded with 0 so that sequence lengths are [8, 5] (prefix mask).
    token_ids = jax.random.randint(k_tok, (B, T), 1, VOCAB, dtype=jnp.int32)
    token_ids = token_ids.at[1, 5:].set(0)
    pos_ids = jax.random.randint(k_pos, (B, T), 1, POS_VOCAB, dtype=jnp.int32)
    pos_ids = jnp.where(token_ids != 0, pos_ids, 0)
    # Precomputed ELMo representations (external model output stand-in).
    elmo_out = jax.random.normal(k_elmo, (B, T, ELMO_EMB), dtype=jnp.float32)
    elmo_out = elmo_out * (token_ids != 0).astype(jnp.float32)[:, :, None]

    logits = elmo_lstm_crf_forward(params, token_ids, pos_ids, elmo_out)
    logits = jax.block_until_ready(logits)
    assert logits.shape == (B, T, LABELS), logits.shape
    assert bool(jnp.all(jnp.isfinite(logits)))
    print("KERNEL_OK")
</pallas_src>

<mosaic_0001>
module attributes {stable_mosaic.version = 11 : i64} {
  func.func @kernel(%arg0: i32, %arg1: memref<128x40xf32, #tpu.memory_space<vmem>>, %arg2: memref<40x1024xbf16, #tpu.memory_space<vmem>>, %arg3: memref<1x1024xf32, #tpu.memory_space<vmem>>, %arg4: memref<128x512xbf16, #tpu.memory_space<vmem>>, %arg5: memref<128x512xbf16, #tpu.memory_space<vmem>>) attributes {dimension_semantics = [#tpu.dimension_semantics<parallel>], iteration_bounds = array<i64: 1>, scalar_prefetch = 0 : i64, scratch_operands = 0 : i64, tpu.core_type = #tpu.core_type<tc>, window_params = [{transform_indices = @transform_0, window_bounds = array<i64: 128, 40>}, {pipeline_mode = #tpu.pipeline_mode<synchronous>, transform_indices = @transform_1, window_bounds = array<i64: 40, 1024>}, {pipeline_mode = #tpu.pipeline_mode<synchronous>, transform_indices = @transform_2, window_bounds = array<i64: 1, 1024>}, {transform_indices = @transform_3, window_bounds = array<i64: 128, 512>}, {transform_indices = @transform_4, window_bounds = array<i64: 128, 512>}]} {
    %c0 = arith.constant 0 : index
    %c0_0 = arith.constant 0 : index
    %0 = vector.load %arg1[%c0, %c0_0] : memref<128x40xf32, #tpu.memory_space<vmem>>, vector<128x40xf32>
    %1 = arith.truncf %0 : vector<128x40xf32> to vector<128x40xbf16>
    %c0_1 = arith.constant 0 : index
    %c0_2 = arith.constant 0 : index
    %2 = vector.load %arg2[%c0_1, %c0_2] : memref<40x1024xbf16, #tpu.memory_space<vmem>>, vector<40x1024xbf16>
    %cst = arith.constant dense<0.000000e+00> : vector<128x1024xf32>
    %3 = tpu.matmul %1, %2, %cst {dimension_numbers = #tpu.dot_dimension_numbers<[1], [0], [0], [1], [0, 0, 1, 1], [], []>} : vector<128x40xbf16>, vector<40x1024xbf16>, vector<128x1024xf32> -> vector<128x1024xf32>
    %c0_3 = arith.constant 0 : index
    %c0_4 = arith.constant 0 : index
    %4 = vector.load %arg3[%c0_3, %c0_4] : memref<1x1024xf32, #tpu.memory_space<vmem>>, vector<1x1024xf32>
    %5 = vector.broadcast %4 : vector<1x1024xf32> to vector<128x1024xf32>
    %6 = arith.addf %3, %5 : vector<128x1024xf32>
    %7 = vector.extract_strided_slice %6 {offsets = [0, 0], sizes = [128, 512], strides = [1, 1]} : vector<128x1024xf32> to vector<128x512xf32>
    %8 = arith.truncf %7 : vector<128x512xf32> to vector<128x512xbf16>
    %c0_5 = arith.constant 0 : index
    %c0_6 = arith.constant 0 : index
    %9 = vector.load %arg4[%c0_5, %c0_6] : memref<128x512xbf16, #tpu.memory_space<vmem>>, vector<128x512xbf16>
    tpu.vector_store %arg4[%c0_5, %c0_6], %8 {strides = array<i32>} : memref<128x512xbf16, #tpu.memory_space<vmem>>, vector<128x512xbf16>,
    %10 = vector.extract_strided_slice %6 {offsets = [0, 512], sizes = [128, 512], strides = [1, 1]} : vector<128x1024xf32> to vector<128x512xf32>
    %11 = arith.truncf %10 : vector<128x512xf32> to vector<128x512xbf16>
    %c0_7 = arith.constant 0 : index
    %c0_8 = arith.constant 0 : index
    %12 = vector.load %arg5[%c0_7, %c0_8] : memref<128x512xbf16, #tpu.memory_space<vmem>>, vector<128x512xbf16>
    tpu.vector_store %arg5[%c0_7, %c0_8], %11 {strides = array<i32>} : memref<128x512xbf16, #tpu.memory_space<vmem>>, vector<128x512xbf16>,
    return
  }
  func.func @transform_0(%arg0: i32) -> (i32, i32) {
    %c0_i32 = arith.constant 0 : i32
    %c0_i32_0 = arith.constant 0 : i32
    return %arg0, %c0_i32 : i32, i32
  }
  func.func @transform_1(%arg0: i32) -> (i32, i32) {
    %c0_i32 = arith.constant 0 : i32
    %c0_i32_0 = arith.constant 0 : i32
    %c0_i32_1 = arith.constant 0 : i32
    return %c0_i32, %c0_i32_0 : i32, i32
  }
  func.func @transform_2(%arg0: i32) -> (i32, i32) {
    %c0_i32 = arith.constant 0 : i32
    %c0_i32_0 = arith.constant 0 : i32
    %c0_i32_1 = arith.constant 0 : i32
    return %c0_i32, %c0_i32_0 : i32, i32
  }
  func.func @transform_3(%arg0: i32) -> (i32, i32) {
    %c0_i32 = arith.constant 0 : i32
    %c0_i32_0 = arith.constant 0 : i32
    return %arg0, %c0_i32 : i32, i32
  }
  func.func @transform_4(%arg0: i32) -> (i32, i32) {
    %c0_i32 = arith.constant 0 : i32
    %c0_i32_0 = arith.constant 0 : i32
    return %arg0, %c0_i32 : i32, i32
  }
}

</mosaic_0001>

<bundles_post_ra>
// kernel: tpu_custom_call.1
= control target key start
LH: loop header
LB: loop body
LE: loop exit
PB: predicated region body
PF: predicated region fallthrough
CT: control target
= control target key end

     0   :  { %10 = vsyncpa [#allocation3], 0  ;;  %v1436_v8 = vmov 0   ;;  %vm230_vm0 = vcmask 1043456   ;;  %vm205_vm1 = vcmask 326656   ;;  %s1856_s0 = inlined_call_operand.vmem [shape: f32[128,40], index: 0, kind: input, shape index: {}]   ;;  %s1857_s1 = inlined_call_operand.vmem [shape: bf16[40,1024], index: 1, kind: input, shape index: {}]   ;;  %s1858_s2 = inlined_call_operand.vmem [shape: f32[1,1024], index: 2, kind: input, shape index: {}]   ;;  %s1859_s3 = inlined_call_operand.hbm [shape: bf16[128,512], index: 3, kind: output, shape index: {0}]   ;;  %s1860_s4 = inlined_call_operand.hbm [shape: bf16[128,512], index: 4, kind: output, shape index: {1}]  }
   0x1   :  { %v43_v0 = vld [vmem:[%s1857_s1] sm:$0xff]  ;;  %v44_v2 = vld [vmem:[%s1857_s1 + $0x8] sm:$0xff]  ;;  %287 = vmatprep.mubr.bf16.mxu0 %v1436_v8  ;;  %400 = vmatprep.mubr.bf16.mxu1 %v1436_v8  ;;  %v45_v23 = vld [vmem:[%s1857_s1 + $0x10] sm:$0xff] }
   0x2   :  { %v47_v1 = vld [vmem:[%s1857_s1 + $0x20] sm:$0xff]  ;;  %v48_v4 = vld [vmem:[%s1857_s1 + $0x28] sm:$0xff]  ;;  %v49_v24 = vld [vmem:[%s1857_s1 + $0x30] sm:$0xff] }
   0x3   :  { %v1188_v3 = vcombine.high %v43_v0, %v47_v1  ;;  %v1187_v5 = vcombine.low %v43_v0, %v47_v1  ;;  %v51_v6 = vld [vmem:[%s1857_s1 + $0x40] sm:$0xff]  ;;  %v1190_v9 = vcombine.high %v44_v2, %v48_v4  ;;  %v1189_v10 = vcombine.low %v44_v2, %v48_v4  ;;  %v52_v12 = vld [vmem:[%s1857_s1 + $0x48] sm:$0xff]  ;;  %v46_v25 = vld [vmem:[%s1857_s1 + $0x18] sm:$0xff] }
   0x4   :  { %v55_v7 = vld [vmem:[%s1857_s1 + $0x60] sm:$0xff]  ;;  %v56_v13 = vld [vmem:[%s1857_s1 + $0x68] sm:$0xff]  ;;  %v50_v26 = vld [vmem:[%s1857_s1 + $0x38] sm:$0xff]  ;;  %v1192_v30 = vcombine.high %v45_v23, %v49_v24  ;;  %v1191_v36 = vcombine.low %v45_v23, %v49_v24 }
   0x5   :  { %v1196_v11 = vcombine.high %v51_v6, %v55_v7  ;;  %v59_v14 = vld [vmem:[%s1857_s1 + $0x80] sm:$0xff]  ;;  %255 = vmatprep.subr.bf16.mxu0 %v1188_v3  ;;  %v1198_v15 = vcombine.high %v52_v12, %v56_v13  ;;  %v60_v16 = vld [vmem:[%s1857_s1 + $0x88] sm:$0xff]  ;;  %368 = vmatprep.subr.bf16.mxu1 %v1190_v9  ;;  %v1195_v17 = vcombine.low %v51_v6, %v55_v7  ;;  %v53_v34 = vld [vmem:[%s1857_s1 + $0x50] sm:$0xff] }
   0x6   :  { %256 = vmatpush1.bf16.msra.mxu0 %v1187_v5  ;;  %369 = vmatpush1.bf16.msra.mxu1 %v1189_v10  ;;  %v1197_v18 = vcombine.low %v52_v12, %v56_v13  ;;  %v1204_v19 = vcombine.high %v59_v14, %v59_v14  ;;  %v1203_v20 = vcombine.low %v59_v14, %v59_v14  ;;  %v19_v27 = vld [vmem:[%s1856_s0] sm:$0xff]  ;;  %v20_v28 = vld [vmem:[%s1856_s0 + $0x8] sm:$0xff]  ;;  %v57_v35 = vld [vmem:[%s1857_s1 + $0x70] sm:$0xff] }
   0x7   :  { %257 = vmatprep.subr.bf16.mxu0 %v1196_v11  ;;  %370 = vmatprep.subr.bf16.mxu1 %v1198_v15  ;;  %v1206_v21 = vcombine.high %v60_v16, %v60_v16  ;;  %v1205_v22 = vcombine.low %v60_v16, %v60_v16  ;;  %v1194_v32 = vcombine.high %v46_v25, %v50_v26  ;;  %v54_v37 = vld [vmem:[%s1857_s1 + $0x58] sm:$0xff] }
   0x8   :  { %v232_v29 = vsel %vm230_vm0, %v1203_v20, 0  ;;  %v1520_v33 = vpack.c.bf16 %v20_v28, %v19_v27  ;;  %v58_v38 = vld [vmem:[%s1857_s1 + $0x78] sm:$0xff] }
   0x9   :  { %v238_v31 = vsel %vm230_vm0, %v1205_v22, 0 }
   0xa   :  { %258 = vmatpush1.bf16.msra.mxu0 %v1195_v17  ;;  %371 = vmatpush1.bf16.msra.mxu1 %v1197_v18 }
   0xb   :  { %1211 = vmatprep.subr.msk.bf16.mxu0 %vm230_vm0, %v1204_v19  ;;  %1220 = vmatprep.subr.msk.bf16.mxu1 %vm230_vm0, %v1206_v21 }
   0xe   :  { %260 = vmatpush1.bf16.msra.mxu0 %v232_v29 }
   0xf   :  { %11 = vsyncpa [#allocation5], 0  ;;  %373 = vmatpush1.bf16.msra.mxu1 %v238_v31  ;;  %481 = vmatprep.subr.bf16.mxu0 %v1192_v30  ;;  %v1193_v39 = vcombine.low %v46_v25, %v50_v26  ;;  %v1200_v40 = vcombine.high %v53_v34, %v57_v35  ;;  %v61_v41 = vld [vmem:[%s1857_s1 + $0x90] sm:$0xff]  ;;  %v1202_v42 = vcombine.high %v54_v37, %v58_v38  ;;  %v62_v43 = vld [vmem:[%s1857_s1 + $0x98] sm:$0xff]  ;;  %v65_v10 = vlaneseq }
  0x10   :  { %594 = vmatprep.subr.bf16.mxu1 %v1194_v32  ;;  %v21_v44 = vld [vmem:[%s1856_s0 + $0x10] sm:$0xff]  ;;  %v22_v45 = vld [vmem:[%s1856_s0 + $0x18] sm:$0xff]  ;;  %v1199_v46 = vcombine.low %v53_v34, %v57_v35  ;;  %v1201_v47 = vcombine.low %v54_v37, %v58_v38  ;;  %v1208_v48 = vcombine.high %v61_v41, %v61_v41  ;;  %v1210_v49 = vcombine.high %v62_v43, %v62_v43  ;;  %v23_v55 = vld [vmem:[%s1856_s0 + $0x20] sm:$0xff] }
  0x11   :  { %1212 = vmatmul.mubr.msk.bf16.vlgmr.msra.gmra.mrb[0].mxu0 %vm205_vm1, %v1520_v33  ;;  %v1207_v50 = vcombine.low %v61_v41, %v61_v41  ;;  %v36_v51 = vpack.c.bf16 %v22_v45, %v21_v44  ;;  %v1209_v52 = vcombine.low %v62_v43, %v62_v43  ;;  %v24_v56 = vld [vmem:[%s1856_s0 + $0x28] sm:$0xff]  ;;  %v25_v58 = vld [vmem:[%s1856_s0 + $0x30] sm:$0xff]  ;;  %v26_v59 = vld [vmem:[%s1856_s0 + $0x38] sm:$0xff]  ;;  %v1652_v11 = vshrl.u32 %v65_v10, 7 }
  0x12   :  { %1221 = vmatmul.mubr.msk.bf16.vlgmr.msra.gmra.mrb[0].mxu1 %vm205_vm1, %v1520_v33  ;;  %482 = vmatpush1.bf16.msra.mxu0 %v1191_v36  ;;  %v37_v57 = vpack.c.bf16 %v24_v56, %v23_v55  ;;  %v38_v60 = vpack.c.bf16 %v26_v59, %v25_v58  ;;  %v27_v61 = vld [vmem:[%s1856_s0 + $0x40] sm:$0xff]  ;;  %v28_v62 = vld [vmem:[%s1856_s0 + $0x48] sm:$0xff]  ;;  %v29_v0 = vld [vmem:[%s1856_s0 + $0x50] sm:$0xff] }
  0x13   :  { %595 = vmatpush1.bf16.msra.mxu1 %v1193_v39  ;;  %297 = vmatprep.mubr.bf16.mxu0 %v1436_v8  ;;  %v244_v53 = vsel %vm230_vm0, %v1207_v50, 0  ;;  %v250_v54 = vsel %vm230_vm0, %v1209_v52, 0  ;;  %v39_v63 = vpack.c.bf16 %v28_v62, %v27_v61  ;;  %v30_v1 = vld [vmem:[%s1856_s0 + $0x58] sm:$0xff]  ;;  %v31_v3 = vld [vmem:[%s1856_s0 + $0x60] sm:$0xff]  ;;  %v32_v4 = vld [vmem:[%s1856_s0 + $0x68] sm:$0xff]  ;;  %v67_v12 = vsub.s32 0, %v1652_v11 }
  0x14   :  { %410 = vmatprep.mubr.bf16.mxu1 %v1436_v8  ;;  %483 = vmatprep.subr.bf16.mxu0 %v1200_v40  ;;  %v40_v2 = vpack.c.bf16 %v30_v1, %v29_v0  ;;  %v41_v5 = vpack.c.bf16 %v32_v4, %v31_v3  ;;  %v33_v6 = vld [vmem:[%s1856_s0 + $0x70] sm:$0xff]  ;;  %v34_v7 = vld [vmem:[%s1856_s0 + $0x78] sm:$0xff]  ;;  %v1658_v13 = vld [vmem:[%s1858_s2] sm:$0xff]  ;;  %v75_v14 = vsub.s32 2, %v1652_v11  ;;  %v71_v15 = vsub.s32 1, %v1652_v11  ;;  %s1437_s2 = smov [#allocation2]  }
  0x15   :  { %596 = vmatprep.subr.bf16.mxu1 %v1202_v42  ;;  %v42_v9 = vpack.c.bf16 %v34_v7, %v33_v6  ;;  %v1664_v16 = vrot.slane %v1658_v13, %v67_v12  ;;  %s1160_s9 = sshll.u32 %s1437_s2, 4  ;;  %s1752_s9 = int_to_ptr.vmem [resolvable:$true] %s1160_s9 }
  0x16   :  { %484 = vmatpush1.bf16.msra.mxu0 %v1199_v46  ;;  %v1667_v17 = vrot.slane %v1658_v13, %v75_v14  ;;  %v1670_v18 = vrot.slane %v1658_v13, %v71_v15  ;;  %s1388_s10 = scalar_lea.vmem %s1752_s9, 4096  ;;  %p1393_p1 = scmp.lt.s32.totalorder %s1752_s9, %s1752_s9 }
  0x17   :  { %597 = vmatpush1.bf16.msra.mxu1 %v1201_v47  ;;  %1229 = vmatprep.subr.msk.bf16.mxu0 %vm230_vm0, %v1208_v48  ;;  %p1389_p0 = scmp.ne.s32.totalorder %s1752_s9, %s1388_s10  ;;  %p1394_p2 = scmp.lt.s32.totalorder %s1388_s10, %s1388_s10 }
  0x18   :  { %1238 = vmatprep.subr.msk.bf16.mxu1 %vm230_vm0, %v1210_v49 }
  0x19   :  { %1213 = vmatmul.mubr.msk.bf16.gmra.mrb[4].mxu0 %vm205_vm1, %v36_v51  ;;  %p1395_p3 = por %p1394_p2, %p1393_p1 }
  0x1a   :  { %1222 = vmatmul.mubr.msk.bf16.gmra.mrb[4].mxu1 %vm205_vm1, %v36_v51  ;;  %307 = vmatprep.mubr.bf16.mxu0 %v1436_v8 }
  0x1b   :  { %420 = vmatprep.mubr.bf16.mxu1 %v1436_v8  ;;  %486 = vmatpush1.bf16.msra.mxu0 %v244_v53  ;;  %p1396_p4 = pnand %p1395_p3, %p1389_p0 }
  0x1c   :  { %599 = vmatpush1.bf16.msra.mxu1 %v250_v54 }
  0x21   :  { %1214 = vmatmul.mubr.msk.bf16.gmra.mrb[8].mxu0 %vm205_vm1, %v37_v57 }
  0x22   :  { %1223 = vmatmul.mubr.msk.bf16.gmra.mrb[8].mxu1 %vm205_vm1, %v37_v57  ;;  %317 = vmatprep.mubr.bf16.mxu0 %v1436_v8 }
  0x23   :  { %430 = vmatprep.mubr.bf16.mxu1 %v1436_v8 }
  0x29   :  { %1215 = vmatmul.mubr.msk.bf16.gmra.mrb[12].mxu0 %vm205_vm1, %v38_v60 }
  0x2a   :  { %1224 = vmatmul.mubr.msk.bf16.gmra.mrb[12].mxu1 %vm205_vm1, %v38_v60  ;;  %327 = vmatprep.mubr.bf16.mxu0 %v1436_v8 }
  0x2b   :  { %440 = vmatprep.mubr.bf16.mxu1 %v1436_v8 }
  0x31   :  { %1216 = vmatmul.mubr.msk.bf16.gmra.mrb[16].mxu0 %vm205_vm1, %v39_v63 }
  0x32   :  { %1225 = vmatmul.mubr.msk.bf16.gmra.mrb[16].mxu1 %vm205_vm1, %v39_v63  ;;  %337 = vmatprep.mubr.bf16.mxu0 %v1436_v8 }
  0x33   :  { %450 = vmatprep.mubr.bf16.mxu1 %v1436_v8 }
  0x39   :  { %1217 = vmatmul.mubr.msk.bf16.gmra.mrb[20].mxu0 %vm205_vm1, %v40_v2 }
  0x3a   :  { %1226 = vmatmul.mubr.msk.bf16.gmra.mrb[20].mxu1 %vm205_vm1, %v40_v2  ;;  %347 = vmatprep.mubr.bf16.mxu0 %v1436_v8 }
  0x3b   :  { %460 = vmatprep.mubr.bf16.mxu1 %v1436_v8 }
  0x41   :  { %1218 = vmatmul.mubr.msk.bf16.gmra.mrb[24].mxu0 %vm205_vm1, %v41_v5 }
  0x42   :  { %1227 = vmatmul.mubr.msk.bf16.gmra.mrb[24].mxu1 %vm205_vm1, %v41_v5  ;;  %357 = vmatprep.mubr.bf16.mxu0 %v1436_v8 }
  0x43   :  { %470 = vmatprep.mubr.bf16.mxu1 %v1436_v8 }
  0x49   :  { %1219 = vmatmul.mubr.msk.bf16.gmra.mrb[28].mxu0 %vm205_vm1, %v42_v9 }
  0x4a   :  { %1228 = vmatmul.mubr.msk.bf16.gmra.mrb[28].mxu1 %vm205_vm1, %v42_v9  ;;  %513 = vmatprep.mubr.bf16.mxu0 %v1436_v8 }
  0x4b   :  { %626 = vmatprep.mubr.bf16.mxu1 %v1436_v8 }
  0x51   :  { %1230 = vmatmul.mubr.msk.bf16.vlgmr.msra.gmra.mrb[32].mxu0 %vm205_vm1, %v1520_v33 }
  0x52   :  { %1239 = vmatmul.mubr.msk.bf16.vlgmr.msra.gmra.mrb[32].mxu1 %vm205_vm1, %v1520_v33  ;;  %523 = vmatprep.mubr.bf16.mxu0 %v1436_v8 }
  0x53   :  { %636 = vmatprep.mubr.bf16.mxu1 %v1436_v8 }
  0x59   :  { %1231 = vmatmul.mubr.msk.bf16.gmra.mrb[36].mxu0 %vm205_vm1, %v36_v51 }
  0x5a   :  { %1240 = vmatmul.mubr.msk.bf16.gmra.mrb[36].mxu1 %vm205_vm1, %v36_v51  ;;  %533 = vmatprep.mubr.bf16.mxu0 %v1436_v8 }
  0x5b   :  { %646 = vmatprep.mubr.bf16.mxu1 %v1436_v8 }
  0x61   :  { %1232 = vmatmul.mubr.msk.bf16.gmra.mrb[40].mxu0 %vm205_vm1, %v37_v57 }
  0x62   :  { %1241 = vmatmul.mubr.msk.bf16.gmra.mrb[40].mxu1 %vm205_vm1, %v37_v57  ;;  %543 = vmatprep.mubr.bf16.mxu0 %v1436_v8 }
  0x63   :  { %656 = vmatprep.mubr.bf16.mxu1 %v1436_v8 }
  0x69   :  { %1233 = vmatmul.mubr.msk.bf16.gmra.mrb[44].mxu0 %vm205_vm1, %v38_v60 }
  0x6a   :  { %1242 = vmatmul.mubr.msk.bf16.gmra.mrb[44].mxu1 %vm205_vm1, %v38_v60  ;;  %553 = vmatprep.mubr.bf16.mxu0 %v1436_v8 }
  0x6b   :  { %666 = vmatprep.mubr.bf16.mxu1 %v1436_v8 }
  0x71   :  { %1234 = vmatmul.mubr.msk.bf16.gmra.mrb[48].mxu0 %vm205_vm1, %v39_v63 }
  0x72   :  { %1243 = vmatmul.mubr.msk.bf16.gmra.mrb[48].mxu1 %vm205_vm1, %v39_v63  ;;  %563 = vmatprep.mubr.bf16.mxu0 %v1436_v8 }
  0x73   :  { %676 = vmatprep.mubr.bf16.mxu1 %v1436_v8 }
  0x79   :  { %1235 = vmatmul.mubr.msk.bf16.gmra.mrb[52].mxu0 %vm205_vm1, %v40_v2 }
  0x7a   :  { %1244 = vmatmul.mubr.msk.bf16.gmra.mrb[52].mxu1 %vm205_vm1, %v40_v2  ;;  %573 = vmatprep.mubr.bf16.mxu0 %v1436_v8 }
  0x7b   :  { %686 = vmatprep.mubr.bf16.mxu1 %v1436_v8 }
  0x81   :  { %1236 = vmatmul.mubr.msk.bf16.gmra.mrb[56].mxu0 %vm205_vm1, %v41_v5 }
  0x82   :  { %1245 = vmatmul.mubr.msk.bf16.gmra.mrb[56].mxu1 %vm205_vm1, %v41_v5  ;;  %583 = vmatprep.mubr.bf16.mxu0 %v1436_v8 }
  0x83   :  { %696 = vmatprep.mubr.bf16.mxu1 %v1436_v8  ;;  %v79_v8 = vsub.s32 3, %v1652_v11 }
  0x85   :  { %v1673_v19 = vrot.slane %v1658_v13, %v79_v8 }
  0x89   :  { %1237 = vmatmul.mubr.msk.bf16.gmra.mrb[60].mxu0 %vm205_vm1, %v42_v9 }
  0x8a   :  { %1246 = vmatmul.mubr.msk.bf16.gmra.mrb[60].mxu1 %vm205_vm1, %v42_v9 }
  0xe4   :  { %v289_v20 = vpop.f32.mrb[0].mxu0 }
  0xe5   :  { %v290_v21 = vadd.f32 %v289_v20, %v1664_v16  ;;  %v402_v22 = vpop.f32.mrb[0].mxu1  ;;  %v291_v23 = vpop.f32.mrb[1].mxu0 }
  0xe6   :  { %v403_v24 = vadd.f32 %v402_v22, %v1667_v17  ;;  %v292_v25 = vadd.f32 %v291_v23, %v1670_v18  ;;  %v404_v26 = vpop.f32.mrb[1].mxu1  ;;  %v293_v27 = vpop.f32.mrb[2].mxu0 }
  0xe7   :  { %v405_v28 = vadd.f32 %v404_v26, %v1673_v19  ;;  %v294_v29 = vadd.f32 %v293_v27, %v1664_v16  ;;  %v406_v30 = vpop.f32.mrb[2].mxu1  ;;  %v295_v31 = vpop.f32.mrb[3].mxu0 }
  0xe8   :  { %v1311_v32 = vpack.c.bf16 %v292_v25, %v290_v21  ;;  %v407_v33 = vadd.f32 %v406_v30, %v1667_v17  ;;  %v296_v34 = vadd.f32 %v295_v31, %v1670_v18  ;;  %v408_v35 = vpop.f32.mrb[3].mxu1 }
  0xe9   :  { %v1312_v36 = vpack.c.bf16 %v405_v28, %v403_v24  ;;  %v409_v37 = vadd.f32 %v408_v35, %v1673_v19 }
  0xea   :  { %899 = vst [vmem:[#allocation2] sm:$0xff] %v1311_v32  ;;  %v1313_v38 = vpack.c.bf16 %v296_v34, %v294_v29 }
  0xeb   :  { %900 = vst [vmem:[#allocation2 + $0x8] sm:$0xff] %v1312_v36  ;;  %v1314_v39 = vpack.c.bf16 %v409_v37, %v407_v33 }
  0xec   :  { %901 = vst [vmem:[#allocation2 + $0x10] sm:$0xff] %v1313_v38  ;;  %v299_v40 = vpop.f32.mrb[4].mxu0 }
  0xed   :  { %902 = vst [vmem:[#allocation2 + $0x18] sm:$0xff] %v1314_v39  ;;  %v300_v41 = vadd.f32 %v299_v40, %v1664_v16  ;;  %v412_v42 = vpop.f32.mrb[4].mxu1  ;;  %v301_v43 = vpop.f32.mrb[5].mxu0 }
  0xee   :  { %v413_v44 = vadd.f32 %v412_v42, %v1667_v17  ;;  %v302_v45 = vadd.f32 %v301_v43, %v1670_v18  ;;  %v414_v46 = vpop.f32.mrb[5].mxu1  ;;  %v303_v47 = vpop.f32.mrb[6].mxu0 }
  0xef   :  { %v415_v48 = vadd.f32 %v414_v46, %v1673_v19  ;;  %v304_v49 = vadd.f32 %v303_v47, %v1664_v16  ;;  %v416_v50 = vpop.f32.mrb[6].mxu1  ;;  %v305_v51 = vpop.f32.mrb[7].mxu0 }
  0xf0   :  { %v1315_v52 = vpack.c.bf16 %v302_v45, %v300_v41  ;;  %v417_v53 = vadd.f32 %v416_v50, %v1667_v17  ;;  %v306_v54 = vadd.f32 %v305_v51, %v1670_v18  ;;  %v418_v55 = vpop.f32.mrb[7].mxu1 }
  0xf1   :  { %v1316_v56 = vpack.c.bf16 %v415_v48, %v413_v44  ;;  %v419_v57 = vadd.f32 %v418_v55, %v1673_v19 }
  0xf2   :  { %903 = vst [vmem:[#allocation2 + $0x20] sm:$0xff] %v1315_v52  ;;  %v1317_v58 = vpack.c.bf16 %v306_v54, %v304_v49 }
  0xf3   :  { %904 = vst [vmem:[#allocation2 + $0x28] sm:$0xff] %v1316_v56  ;;  %v1318_v59 = vpack.c.bf16 %v419_v57, %v417_v53 }
  0xf4   :  { %905 = vst [vmem:[#allocation2 + $0x30] sm:$0xff] %v1317_v58  ;;  %v309_v60 = vpop.f32.mrb[8].mxu0 }
  0xf5   :  { %906 = vst [vmem:[#allocation2 + $0x38] sm:$0xff] %v1318_v59  ;;  %v310_v61 = vadd.f32 %v309_v60, %v1664_v16  ;;  %v422_v62 = vpop.f32.mrb[8].mxu1  ;;  %v311_v63 = vpop.f32.mrb[9].mxu0 }
  0xf6   :  { %v423_v0 = vadd.f32 %v422_v62, %v1667_v17  ;;  %v312_v1 = vadd.f32 %v311_v63, %v1670_v18  ;;  %v424_v2 = vpop.f32.mrb[9].mxu1  ;;  %v313_v3 = vpop.f32.mrb[10].mxu0 }
  0xf7   :  { %v425_v4 = vadd.f32 %v424_v2, %v1673_v19  ;;  %v314_v5 = vadd.f32 %v313_v3, %v1664_v16  ;;  %v426_v6 = vpop.f32.mrb[10].mxu1  ;;  %v315_v7 = vpop.f32.mrb[11].mxu0 }
  0xf8   :  { %v1319_v9 = vpack.c.bf16 %v312_v1, %v310_v61  ;;  %v427_v10 = vadd.f32 %v426_v6, %v1667_v17  ;;  %v316_v12 = vadd.f32 %v315_v7, %v1670_v18  ;;  %v428_v14 = vpop.f32.mrb[11].mxu1 }
  0xf9   :  { %v1320_v15 = vpack.c.bf16 %v425_v4, %v423_v0  ;;  %v429_v8 = vadd.f32 %v428_v14, %v1673_v19 }
  0xfa   :  { %907 = vst [vmem:[#allocation2 + $0x40] sm:$0xff] %v1319_v9  ;;  %v1321_v20 = vpack.c.bf16 %v316_v12, %v314_v5 }
  0xfb   :  { %908 = vst [vmem:[#allocation2 + $0x48] sm:$0xff] %v1320_v15  ;;  %v1322_v21 = vpack.c.bf16 %v429_v8, %v427_v10 }
  0xfc   :  { %909 = vst [vmem:[#allocation2 + $0x50] sm:$0xff] %v1321_v20  ;;  %v319_v22 = vpop.f32.mrb[12].mxu0 }
  0xfd   :  { %910 = vst [vmem:[#allocation2 + $0x58] sm:$0xff] %v1322_v21  ;;  %v320_v23 = vadd.f32 %v319_v22, %v1664_v16  ;;  %v432_v24 = vpop.f32.mrb[12].mxu1  ;;  %v321_v25 = vpop.f32.mrb[13].mxu0 }
  0xfe   :  { %v433_v26 = vadd.f32 %v432_v24, %v1667_v17  ;;  %v322_v27 = vadd.f32 %v321_v25, %v1670_v18  ;;  %v434_v28 = vpop.f32.mrb[13].mxu1  ;;  %v323_v29 = vpop.f32.mrb[14].mxu0 }
  0xff   :  { %v435_v30 = vadd.f32 %v434_v28, %v1673_v19  ;;  %v324_v31 = vadd.f32 %v323_v29, %v1664_v16  ;;  %v436_v32 = vpop.f32.mrb[14].mxu1  ;;  %v325_v33 = vpop.f32.mrb[15].mxu0 }
 0x100   :  { %v1323_v34 = vpack.c.bf16 %v322_v27, %v320_v23  ;;  %v437_v35 = vadd.f32 %v436_v32, %v1667_v17  ;;  %v326_v36 = vadd.f32 %v325_v33, %v1670_v18  ;;  %v438_v37 = vpop.f32.mrb[15].mxu1 }
 0x101   :  { %v1324_v38 = vpack.c.bf16 %v435_v30, %v433_v26  ;;  %v439_v39 = vadd.f32 %v438_v37, %v1673_v19 }
 0x102   :  { %911 = vst [vmem:[#allocation2 + $0x60] sm:$0xff] %v1323_v34  ;;  %v1325_v40 = vpack.c.bf16 %v326_v36, %v324_v31 }
 0x103   :  { %912 = vst [vmem:[#allocation2 + $0x68] sm:$0xff] %v1324_v38  ;;  %v1326_v41 = vpack.c.bf16 %v439_v39, %v437_v35 }
 0x104   :  { %913 = vst [vmem:[#allocation2 + $0x70] sm:$0xff] %v1325_v40  ;;  %v329_v42 = vpop.f32.mrb[16].mxu0 }
 0x105   :  { %914 = vst [vmem:[#allocation2 + $0x78] sm:$0xff] %v1326_v41  ;;  %v330_v43 = vadd.f32 %v329_v42, %v1664_v16  ;;  %v442_v44 = vpop.f32.mrb[16].mxu1  ;;  %v331_v45 = vpop.f32.mrb[17].mxu0 }
 0x106   :  { %v443_v46 = vadd.f32 %v442_v44, %v1667_v17  ;;  %v332_v47 = vadd.f32 %v331_v45, %v1670_v18  ;;  %v444_v48 = vpop.f32.mrb[17].mxu1  ;;  %v333_v49 = vpop.f32.mrb[18].mxu0 }
 0x107   :  { %v445_v50 = vadd.f32 %v444_v48, %v1673_v19  ;;  %v334_v51 = vadd.f32 %v333_v49, %v1664_v16  ;;  %v446_v52 = vpop.f32.mrb[18].mxu1  ;;  %v335_v53 = vpop.f32.mrb[19].mxu0  ;;  %v83_v48 = vsub.s32 4, %v1652_v11 }
 0x108   :  { %v1327_v54 = vpack.c.bf16 %v332_v47, %v330_v43  ;;  %v447_v55 = vadd.f32 %v446_v52, %v1667_v17  ;;  %v336_v56 = vadd.f32 %v335_v53, %v1670_v18  ;;  %v448_v57 = vpop.f32.mrb[19].mxu1  ;;  %v91_v53 = vsub.s32 6, %v1652_v11 }
 0x109   :  { %v1328_v58 = vpack.c.bf16 %v445_v50, %v443_v46  ;;  %v449_v59 = vadd.f32 %v448_v57, %v1673_v19 }
 0x10a   :  { %915 = vst [vmem:[#allocation2 + $0x80] sm:$0xff] %v1327_v54  ;;  %v1329_v60 = vpack.c.bf16 %v336_v56, %v334_v51  ;;  %v87_v54 = vsub.s32 5, %v1652_v11 }
 0x10b   :  { %916 = vst [vmem:[#allocation2 + $0x88] sm:$0xff] %v1328_v58  ;;  %v1330_v61 = vpack.c.bf16 %v449_v59, %v447_v55  ;;  %v95_v59 = vsub.s32 7, %v1652_v11 }
 0x10c   :  { %917 = vst [vmem:[#allocation2 + $0x90] sm:$0xff] %v1329_v60  ;;  %v339_v62 = vpop.f32.mrb[20].mxu0  ;;  %v1750_v11 = vrot.slane %v1658_v13, %v87_v54 }
 0x10d   :  { %918 = vst [vmem:[#allocation2 + $0x98] sm:$0xff] %v1330_v61  ;;  %v340_v63 = vadd.f32 %v339_v62, %v1664_v16  ;;  %v452_v0 = vpop.f32.mrb[20].mxu1  ;;  %v341_v1 = vpop.f32.mrb[21].mxu0 }
 0x10e   :  { %v453_v2 = vadd.f32 %v452_v0, %v1667_v17  ;;  %v342_v3 = vadd.f32 %v341_v1, %v1670_v18  ;;  %v454_v4 = vpop.f32.mrb[21].mxu1  ;;  %v343_v5 = vpop.f32.mrb[22].mxu0 }
 0x10f   :  { %v455_v6 = vadd.f32 %v454_v4, %v1673_v19  ;;  %v344_v7 = vadd.f32 %v343_v5, %v1664_v16  ;;  %v456_v9 = vpop.f32.mrb[22].mxu1  ;;  %v345_v10 = vpop.f32.mrb[23].mxu0 }
 0x110   :  { %v1331_v12 = vpack.c.bf16 %v342_v3, %v340_v63  ;;  %v457_v14 = vadd.f32 %v456_v9, %v1667_v17  ;;  %v346_v15 = vadd.f32 %v345_v10, %v1670_v18  ;;  %v458_v8 = vpop.f32.mrb[23].mxu1  ;;  %v1747_v3 = vrot.slane %v1658_v13, %v91_v53 }
 0x111   :  { %v1332_v20 = vpack.c.bf16 %v455_v6, %v453_v2  ;;  %v459_v21 = vadd.f32 %v458_v8, %v1673_v19  ;;  %v1744_v2 = vrot.slane %v1658_v13, %v83_v48 }
 0x112   :  { %919 = vst [vmem:[#allocation2 + $0xa0] sm:$0xff] %v1331_v12  ;;  %v1333_v22 = vpack.c.bf16 %v346_v15, %v344_v7 }
 0x113   :  { %920 = vst [vmem:[#allocation2 + $0xa8] sm:$0xff] %v1332_v20  ;;  %v1334_v23 = vpack.c.bf16 %v459_v21, %v457_v14 }
 0x114   :  { %921 = vst [vmem:[#allocation2 + $0xb0] sm:$0xff] %v1333_v22  ;;  %v349_v24 = vpop.f32.mrb[24].mxu0 }
 0x115   :  { %922 = vst [vmem:[#allocation2 + $0xb8] sm:$0xff] %v1334_v23  ;;  %v350_v25 = vadd.f32 %v349_v24, %v1664_v16  ;;  %v462_v26 = vpop.f32.mrb[24].mxu1  ;;  %v351_v27 = vpop.f32.mrb[25].mxu0 }
 0x116   :  { %v463_v28 = vadd.f32 %v462_v26, %v1667_v17  ;;  %v352_v29 = vadd.f32 %v351_v27, %v1670_v18  ;;  %v464_v30 = vpop.f32.mrb[25].mxu1  ;;  %v353_v31 = vpop.f32.mrb[26].mxu0 }
 0x117   :  { %v465_v32 = vadd.f32 %v464_v30, %v1673_v19  ;;  %v354_v33 = vadd.f32 %v353_v31, %v1664_v16  ;;  %v466_v34 = vpop.f32.mrb[26].mxu1  ;;  %v355_v35 = vpop.f32.mrb[27].mxu0 }
 0x118   :  { %v1335_v36 = vpack.c.bf16 %v352_v29, %v350_v25  ;;  %v467_v37 = vadd.f32 %v466_v34, %v1667_v17  ;;  %v356_v38 = vadd.f32 %v355_v35, %v1670_v18  ;;  %v468_v39 = vpop.f32.mrb[27].mxu1 }
 0x119   :  { %v1336_v40 = vpack.c.bf16 %v465_v32, %v463_v28  ;;  %v469_v41 = vadd.f32 %v468_v39, %v1673_v19 }
 0x11a   :  { %923 = vst [vmem:[#allocation2 + $0xc0] sm:$0xff] %v1335_v36  ;;  %v1337_v42 = vpack.c.bf16 %v356_v38, %v354_v33 }
 0x11b   :  { %924 = vst [vmem:[#allocation2 + $0xc8] sm:$0xff] %v1336_v40  ;;  %v1338_v43 = vpack.c.bf16 %v469_v41, %v467_v37 }
 0x11c   :  { %925 = vst [vmem:[#allocation2 + $0xd0] sm:$0xff] %v1337_v42  ;;  %v359_v44 = vpop.f32.mrb[28].mxu0 }
 0x11d   :  { %926 = vst [vmem:[#allocation2 + $0xd8] sm:$0xff] %v1338_v43  ;;  %v360_v45 = vadd.f32 %v359_v44, %v1664_v16  ;;  %v472_v46 = vpop.f32.mrb[28].mxu1  ;;  %v361_v47 = vpop.f32.mrb[29].mxu0 }
 0x11e   :  { %v473_v49 = vadd.f32 %v472_v46, %v1667_v17  ;;  %v362_v50 = vadd.f32 %v361_v47, %v1670_v18  ;;  %v474_v51 = vpop.f32.mrb[29].mxu1  ;;  %v363_v52 = vpop.f32.mrb[30].mxu0 }
 0x11f   :  { %v475_v55 = vadd.f32 %v474_v51, %v1673_v19  ;;  %v364_v56 = vadd.f32 %v363_v52, %v1664_v16  ;;  %v476_v57 = vpop.f32.mrb[30].mxu1  ;;  %v365_v58 = vpop.f32.mrb[31].mxu0 }
 0x120   :  { %v1339_v60 = vpack.c.bf16 %v362_v50, %v360_v45  ;;  %v477_v61 = vadd.f32 %v476_v57, %v1667_v17  ;;  %v366_v62 = vadd.f32 %v365_v58, %v1670_v18  ;;  %v478_v63 = vpop.f32.mrb[31].mxu1  ;;  %v1755_v18 = vrot.slane %v1658_v13, %v95_v59 }
 0x121   :  { %v1340_v0 = vpack.c.bf16 %v475_v55, %v473_v49  ;;  %v479_v1 = vadd.f32 %v478_v63, %v1673_v19 }
 0x122   :  { %927 = vst [vmem:[#allocation2 + $0xe0] sm:$0xff] %v1339_v60  ;;  %v1341_v16 = vpack.c.bf16 %v366_v62, %v364_v56 }
 0x123   :  { %928 = vst [vmem:[#allocation2 + $0xe8] sm:$0xff] %v1340_v0  ;;  %v1342_v17 = vpack.c.bf16 %v479_v1, %v477_v61 }
 0x124   :  { %929 = vst [vmem:[#allocation2 + $0xf0] sm:$0xff] %v1341_v16  ;;  %v515_v19 = vpop.f32.mrb[32].mxu0 }
 0x125   :  { %930 = vst [vmem:[#allocation2 + $0xf8] sm:$0xff] %v1342_v17  ;;  %v516_v4 = vadd.f32 %v515_v19, %v1744_v2  ;;  %v628_v5 = vpop.f32.mrb[32].mxu1  ;;  %v517_v6 = vpop.f32.mrb[33].mxu0 }
 0x126   :  { %v629_v7 = vadd.f32 %v628_v5, %v1747_v3  ;;  %v518_v9 = vadd.f32 %v517_v6, %v1750_v11  ;;  %v630_v10 = vpop.f32.mrb[33].mxu1  ;;  %v519_v12 = vpop.f32.mrb[34].mxu0 }
 0x127   :  { %1399 = shalt.err (!%p1396_p4)
}
 0x128   :  { %s1400_s12 = scalar_lea.hbm %s1859_s3, 4096 }
 0x129   :  { %p1401_p5 = scmp.ne.s32.totalorder %s1859_s3, %s1400_s12  ;;  %p1404_p6 = scmp.lt.u32.totalorder %s1400_s12, %s1859_s3 }
 0x12b   :  { %p1406_p7 = pnand %p1404_p6, %p1401_p5 }
 0x12d   :  { %1409 = shalt.err (!%p1406_p7)
}
 0x12e   :  { %s1438_s17 = smov 256   ;;  %s1439_s18 = smov 16   ;;  %v631_v13 = vadd.f32 %v630_v10, %v1755_v18  ;;  %v520_v14 = vadd.f32 %v519_v12, %v1744_v2  ;;  %v632_v15 = vpop.f32.mrb[34].mxu1  ;;  %v521_v8 = vpop.f32.mrb[35].mxu0  ;;  %v1343_v20 = vpack.c.bf16 %v518_v9, %v516_v4 }
 0x12f   :  { %1166 = dma.vmem_to_hbm [thread:$0]  %s1752_s9, 4096, %s1859_s3, [#allocation3], %s1438_s17, %s1438_s17, %s1439_s18   ;;  %v633_v21 = vadd.f32 %v632_v15, %v1747_v3  ;;  %v522_v22 = vadd.f32 %v521_v8, %v1750_v11  ;;  %v634_v23 = vpop.f32.mrb[35].mxu1  ;;  %v525_v28 = vpop.f32.mrb[36].mxu0 }
 0x130   :  { %v1344_v24 = vpack.c.bf16 %v631_v13, %v629_v7  ;;  %v635_v25 = vadd.f32 %v634_v23, %v1755_v18  ;;  %1123 = vst [vmem:[#allocation4] sm:$0xff] %v1343_v20  ;;  %v526_v29 = vadd.f32 %v525_v28, %v1744_v2  ;;  %v638_v30 = vpop.f32.mrb[36].mxu1  ;;  %v527_v31 = vpop.f32.mrb[37].mxu0  ;;  %s1440_s3 = smov [#allocation4]  }
 0x131   :  { %v1345_v26 = vpack.c.bf16 %v522_v22, %v520_v14  ;;  %v639_v32 = vadd.f32 %v638_v30, %v1747_v3  ;;  %v528_v33 = vadd.f32 %v527_v31, %v1750_v11  ;;  %v640_v34 = vpop.f32.mrb[37].mxu1  ;;  %v529_v35 = vpop.f32.mrb[38].mxu0  ;;  %s1172_s21 = sshll.u32 %s1440_s3, 4  ;;  %s1173_s21 = int_to_ptr.vmem [resolvable:$true] %s1172_s21 }
 0x132   :  { %1124 = vst [vmem:[#allocation4 + $0x8] sm:$0xff] %v1344_v24  ;;  %v1346_v27 = vpack.c.bf16 %v635_v25, %v633_v21  ;;  %v641_v36 = vadd.f32 %v640_v34, %v1755_v18  ;;  %v530_v37 = vadd.f32 %v529_v35, %v1744_v2  ;;  %v642_v38 = vpop.f32.mrb[38].mxu1  ;;  %v531_v39 = vpop.f32.mrb[39].mxu0  ;;  %s1410_s22 = scalar_lea.vmem %s1173_s21, 4096  ;;  %p1415_p9 = scmp.lt.s32.totalorder %s1173_s21, %s1173_s21 }
 0x133   :  { %1125 = vst [vmem:[#allocation4 + $0x10] sm:$0xff] %v1345_v26  ;;  %v1347_v40 = vpack.c.bf16 %v528_v33, %v526_v29  ;;  %v643_v41 = vadd.f32 %v642_v38, %v1747_v3  ;;  %v532_v42 = vadd.f32 %v531_v39, %v1750_v11  ;;  %v644_v43 = vpop.f32.mrb[39].mxu1  ;;  %p1411_p8 = scmp.ne.s32.totalorder %s1173_s21, %s1410_s22  ;;  %p1416_p10 = scmp.lt.s32.totalorder %s1410_s22, %s1410_s22 }
 0x134   :  { %1126 = vst [vmem:[#allocation4 + $0x18] sm:$0xff] %v1346_v27  ;;  %v1348_v44 = vpack.c.bf16 %v641_v36, %v639_v32  ;;  %v645_v45 = vadd.f32 %v644_v43, %v1755_v18  ;;  %v535_v48 = vpop.f32.mrb[40].mxu0 }
 0x135   :  { %1127 = vst [vmem:[#allocation4 + $0x20] sm:$0xff] %v1347_v40  ;;  %v1349_v46 = vpack.c.bf16 %v532_v42, %v530_v37  ;;  %v536_v49 = vadd.f32 %v535_v48, %v1744_v2  ;;  %v648_v50 = vpop.f32.mrb[40].mxu1  ;;  %v537_v51 = vpop.f32.mrb[41].mxu0  ;;  %p1417_p11 = por %p1416_p10, %p1415_p9 }
 0x136   :  { %1128 = vst [vmem:[#allocation4 + $0x28] sm:$0xff] %v1348_v44  ;;  %v1350_v47 = vpack.c.bf16 %v645_v45, %v643_v41  ;;  %v649_v52 = vadd.f32 %v648_v50, %v1747_v3  ;;  %v538_v53 = vadd.f32 %v537_v51, %v1750_v11  ;;  %v650_v54 = vpop.f32.mrb[41].mxu1  ;;  %v539_v55 = vpop.f32.mrb[42].mxu0 }
 0x137   :  { %1129 = vst [vmem:[#allocation4 + $0x30] sm:$0xff] %v1349_v46  ;;  %v651_v56 = vadd.f32 %v650_v54, %v1755_v18  ;;  %v540_v57 = vadd.f32 %v539_v55, %v1744_v2  ;;  %v652_v58 = vpop.f32.mrb[42].mxu1  ;;  %v541_v59 = vpop.f32.mrb[43].mxu0  ;;  %p1418_p12 = pnand %p1417_p11, %p1411_p8 }
 0x138   :  { %1130 = vst [vmem:[#allocation4 + $0x38] sm:$0xff] %v1350_v47  ;;  %v1351_v60 = vpack.c.bf16 %v538_v53, %v536_v49  ;;  %v653_v61 = vadd.f32 %v652_v58, %v1747_v3  ;;  %v542_v62 = vadd.f32 %v541_v59, %v1750_v11  ;;  %v654_v63 = vpop.f32.mrb[43].mxu1 }
 0x139   :  { %v1352_v0 = vpack.c.bf16 %v651_v56, %v649_v52  ;;  %v655_v1 = vadd.f32 %v654_v63, %v1755_v18 }
 0x13a   :  { %1131 = vst [vmem:[#allocation4 + $0x40] sm:$0xff] %v1351_v60  ;;  %v1353_v16 = vpack.c.bf16 %v542_v62, %v540_v57 }
 0x13b   :  { %1132 = vst [vmem:[#allocation4 + $0x48] sm:$0xff] %v1352_v0  ;;  %v1354_v17 = vpack.c.bf16 %v655_v1, %v653_v61 }
 0x13c   :  { %1133 = vst [vmem:[#allocation4 + $0x50] sm:$0xff] %v1353_v16  ;;  %v545_v19 = vpop.f32.mrb[44].mxu0 }
 0x13d   :  { %1134 = vst [vmem:[#allocation4 + $0x58] sm:$0xff] %v1354_v17  ;;  %v546_v4 = vadd.f32 %v545_v19, %v1744_v2  ;;  %v658_v5 = vpop.f32.mrb[44].mxu1  ;;  %v547_v6 = vpop.f32.mrb[45].mxu0 }
 0x13e   :  { %v659_v7 = vadd.f32 %v658_v5, %v1747_v3  ;;  %v548_v9 = vadd.f32 %v547_v6, %v1750_v11  ;;  %v660_v10 = vpop.f32.mrb[45].mxu1  ;;  %v549_v12 = vpop.f32.mrb[46].mxu0 }
 0x13f   :  { %v661_v13 = vadd.f32 %v660_v10, %v1755_v18  ;;  %v550_v14 = vadd.f32 %v549_v12, %v1744_v2  ;;  %v662_v15 = vpop.f32.mrb[46].mxu1  ;;  %v551_v8 = vpop.f32.mrb[47].mxu0 }
 0x140   :  { %v1355_v20 = vpack.c.bf16 %v548_v9, %v546_v4  ;;  %v663_v21 = vadd.f32 %v662_v15, %v1747_v3  ;;  %v552_v22 = vadd.f32 %v551_v8, %v1750_v11  ;;  %v664_v23 = vpop.f32.mrb[47].mxu1 }
 0x141   :  { %v1356_v24 = vpack.c.bf16 %v661_v13, %v659_v7  ;;  %v665_v25 = vadd.f32 %v664_v23, %v1755_v18 }
 0x142   :  { %1135 = vst [vmem:[#allocation4 + $0x60] sm:$0xff] %v1355_v20  ;;  %v1357_v26 = vpack.c.bf16 %v552_v22, %v550_v14 }
 0x143   :  { %1136 = vst [vmem:[#allocation4 + $0x68] sm:$0xff] %v1356_v24  ;;  %v1358_v27 = vpack.c.bf16 %v665_v25, %v663_v21 }
 0x144   :  { %1137 = vst [vmem:[#allocation4 + $0x70] sm:$0xff] %v1357_v26  ;;  %v555_v28 = vpop.f32.mrb[48].mxu0 }
 0x145   :  { %1138 = vst [vmem:[#allocation4 + $0x78] sm:$0xff] %v1358_v27  ;;  %v556_v29 = vadd.f32 %v555_v28, %v1744_v2  ;;  %v668_v30 = vpop.f32.mrb[48].mxu1  ;;  %v557_v31 = vpop.f32.mrb[49].mxu0 }
 0x146   :  { %v669_v32 = vadd.f32 %v668_v30, %v1747_v3  ;;  %v558_v33 = vadd.f32 %v557_v31, %v1750_v11  ;;  %v670_v34 = vpop.f32.mrb[49].mxu1  ;;  %v559_v35 = vpop.f32.mrb[50].mxu0 }
 0x147   :  { %v671_v36 = vadd.f32 %v670_v34, %v1755_v18  ;;  %v560_v37 = vadd.f32 %v559_v35, %v1744_v2  ;;  %v672_v38 = vpop.f32.mrb[50].mxu1  ;;  %v561_v39 = vpop.f32.mrb[51].mxu0 }
 0x148   :  { %v1359_v40 = vpack.c.bf16 %v558_v33, %v556_v29  ;;  %v673_v41 = vadd.f32 %v672_v38, %v1747_v3  ;;  %v562_v42 = vadd.f32 %v561_v39, %v1750_v11  ;;  %v674_v43 = vpop.f32.mrb[51].mxu1 }
 0x149   :  { %v1360_v44 = vpack.c.bf16 %v671_v36, %v669_v32  ;;  %v675_v45 = vadd.f32 %v674_v43, %v1755_v18 }
 0x14a   :  { %1139 = vst [vmem:[#allocation4 + $0x80] sm:$0xff] %v1359_v40  ;;  %v1361_v46 = vpack.c.bf16 %v562_v42, %v560_v37 }
 0x14b   :  { %1140 = vst [vmem:[#allocation4 + $0x88] sm:$0xff] %v1360_v44  ;;  %v1362_v47 = vpack.c.bf16 %v675_v45, %v673_v41 }
 0x14c   :  { %1141 = vst [vmem:[#allocation4 + $0x90] sm:$0xff] %v1361_v46  ;;  %v565_v48 = vpop.f32.mrb[52].mxu0 }
 0x14d   :  { %1142 = vst [vmem:[#allocation4 + $0x98] sm:$0xff] %v1362_v47  ;;  %v566_v49 = vadd.f32 %v565_v48, %v1744_v2  ;;  %v678_v50 = vpop.f32.mrb[52].mxu1  ;;  %v567_v51 = vpop.f32.mrb[53].mxu0 }
 0x14e   :  { %v679_v52 = vadd.f32 %v678_v50, %v1747_v3  ;;  %v568_v53 = vadd.f32 %v567_v51, %v1750_v11  ;;  %v680_v54 = vpop.f32.mrb[53].mxu1  ;;  %v569_v55 = vpop.f32.mrb[54].mxu0 }
 0x14f   :  { %v681_v56 = vadd.f32 %v680_v54, %v1755_v18  ;;  %v570_v57 = vadd.f32 %v569_v55, %v1744_v2  ;;  %v682_v58 = vpop.f32.mrb[54].mxu1  ;;  %v571_v59 = vpop.f32.mrb[55].mxu0 }
 0x150   :  { %v1363_v60 = vpack.c.bf16 %v568_v53, %v566_v49  ;;  %v683_v61 = vadd.f32 %v682_v58, %v1747_v3  ;;  %v572_v62 = vadd.f32 %v571_v59, %v1750_v11  ;;  %v684_v63 = vpop.f32.mrb[55].mxu1 }
 0x151   :  { %v1364_v0 = vpack.c.bf16 %v681_v56, %v679_v52  ;;  %v685_v1 = vadd.f32 %v684_v63, %v1755_v18 }
 0x152   :  { %1143 = vst [vmem:[#allocation4 + $0xa0] sm:$0xff] %v1363_v60  ;;  %v1365_v16 = vpack.c.bf16 %v572_v62, %v570_v57 }
 0x153   :  { %1144 = vst [vmem:[#allocation4 + $0xa8] sm:$0xff] %v1364_v0  ;;  %v1366_v17 = vpack.c.bf16 %v685_v1, %v683_v61 }
 0x154   :  { %1145 = vst [vmem:[#allocation4 + $0xb0] sm:$0xff] %v1365_v16  ;;  %v575_v19 = vpop.f32.mrb[56].mxu0 }
 0x155   :  { %1146 = vst [vmem:[#allocation4 + $0xb8] sm:$0xff] %v1366_v17  ;;  %v576_v4 = vadd.f32 %v575_v19, %v1744_v2  ;;  %v688_v5 = vpop.f32.mrb[56].mxu1  ;;  %v577_v6 = vpop.f32.mrb[57].mxu0 }
 0x156   :  { %v689_v7 = vadd.f32 %v688_v5, %v1747_v3  ;;  %v578_v9 = vadd.f32 %v577_v6, %v1750_v11  ;;  %v690_v10 = vpop.f32.mrb[57].mxu1  ;;  %v579_v12 = vpop.f32.mrb[58].mxu0 }
 0x157   :  { %v691_v13 = vadd.f32 %v690_v10, %v1755_v18  ;;  %v580_v14 = vadd.f32 %v579_v12, %v1744_v2  ;;  %v692_v15 = vpop.f32.mrb[58].mxu1  ;;  %v581_v8 = vpop.f32.mrb[59].mxu0 }
 0x158   :  { %v1367_v20 = vpack.c.bf16 %v578_v9, %v576_v4  ;;  %v693_v21 = vadd.f32 %v692_v15, %v1747_v3  ;;  %v582_v22 = vadd.f32 %v581_v8, %v1750_v11  ;;  %v694_v23 = vpop.f32.mrb[59].mxu1 }
 0x159   :  { %v1368_v24 = vpack.c.bf16 %v691_v13, %v689_v7  ;;  %v695_v25 = vadd.f32 %v694_v23, %v1755_v18 }
 0x15a   :  { %1147 = vst [vmem:[#allocation4 + $0xc0] sm:$0xff] %v1367_v20  ;;  %v1369_v26 = vpack.c.bf16 %v582_v22, %v580_v14 }
 0x15b   :  { %1148 = vst [vmem:[#allocation4 + $0xc8] sm:$0xff] %v1368_v24  ;;  %v1370_v27 = vpack.c.bf16 %v695_v25, %v693_v21 }
 0x15c   :  { %1149 = vst [vmem:[#allocation4 + $0xd0] sm:$0xff] %v1369_v26  ;;  %v585_v28 = vpop.f32.mrb[60].mxu0 }
 0x15d   :  { %1150 = vst [vmem:[#allocation4 + $0xd8] sm:$0xff] %v1370_v27  ;;  %v586_v29 = vadd.f32 %v585_v28, %v1744_v2  ;;  %v698_v30 = vpop.f32.mrb[60].mxu1  ;;  %v587_v31 = vpop.f32.mrb[61].mxu0 }
 0x15e   :  { %v699_v32 = vadd.f32 %v698_v30, %v1747_v3  ;;  %v588_v33 = vadd.f32 %v587_v31, %v1750_v11  ;;  %v700_v34 = vpop.f32.mrb[61].mxu1  ;;  %v589_v35 = vpop.f32.mrb[62].mxu0 }
 0x15f   :  { %v701_v36 = vadd.f32 %v700_v34, %v1755_v18  ;;  %v590_v37 = vadd.f32 %v589_v35, %v1744_v2  ;;  %v702_v38 = vpop.f32.mrb[62].mxu1  ;;  %v591_v39 = vpop.f32.mrb[63].mxu0 }
 0x160   :  { %v1371_v40 = vpack.c.bf16 %v588_v33, %v586_v29  ;;  %v703_v41 = vadd.f32 %v702_v38, %v1747_v3  ;;  %v592_v42 = vadd.f32 %v591_v39, %v1750_v11  ;;  %v704_v43 = vpop.f32.mrb[63].mxu1 }
 0x161   :  { %v1372_v44 = vpack.c.bf16 %v701_v36, %v699_v32  ;;  %v705_v45 = vadd.f32 %v704_v43, %v1755_v18 }
 0x162   :  { %1151 = vst [vmem:[#allocation4 + $0xe0] sm:$0xff] %v1371_v40  ;;  %v1373_v46 = vpack.c.bf16 %v592_v42, %v590_v37 }
 0x163   :  { %1152 = vst [vmem:[#allocation4 + $0xe8] sm:$0xff] %v1372_v44  ;;  %v1374_v47 = vpack.c.bf16 %v705_v45, %v703_v41 }
 0x164   :  { %1153 = vst [vmem:[#allocation4 + $0xf0] sm:$0xff] %v1373_v46 }
 0x165   :  { %1154 = vst [vmem:[#allocation4 + $0xf8] sm:$0xff] %v1374_v47 }
 0x166   :  { %1421 = shalt.err (!%p1418_p12)
}
 0x167   :  { %s1422_s25 = scalar_lea.hbm %s1860_s4, 4096 }
 0x168   :  { %p1423_p13 = scmp.ne.s32.totalorder %s1860_s4, %s1422_s25  ;;  %p1426_p0 = scmp.lt.u32.totalorder %s1422_s25, %s1860_s4 }
 0x16a   :  { %p1428_p1 = pnand %p1426_p0, %p1423_p13 }
 0x16c   :  { %1431 = shalt.err (!%p1428_p1)
}
 0x16d   :  { %1178 = dma.vmem_to_hbm [thread:$0]  %s1173_s21, 4096, %s1860_s4, [#allocation5], %s1438_s17, %s1438_s17, %s1439_s18  }
 0x16e   :  { %1432 = dma.done.wait [#allocation3], 4096  }
 0x16f   :  { %1433 = vsyncadd [#allocation3], 4294963200 }
 0x170   :  { %1434 = dma.done.wait [#allocation5], 4096  }
 0x171   :  { %1435 = vsyncadd [#allocation5], 4294963200 }
 0x172   :  { %1185 = vsyncpa [#allocation3], 1 }
 0x173   :  { %1186 = vsyncpa [#allocation5], 1 }

</bundles_post_ra>
